<compile_context>
chip_gen: v5e
topology: v5e:2x2
jax: 0.10.0
libtpu: 0.0.40
codegen_flags: <defaults>
</compile_context>

<pallas_src>
import jax
import jax.numpy as jnp
from jax import lax
from jax.experimental import pallas as pl
from jax.experimental.pallas import tpu as pltpu

_BN_EPS = 1e-5


def _bn_linear_kernel(x_ref, scale_ref, bias_ref, w_ref, feat_ref, out_ref):
    """Fused inference BatchNorm1d + bias-free Linear for one part.

    x_ref:     (B, D)   part features
    scale_ref: (1, D)   gamma / sqrt(var + eps)
    bias_ref:  (1, D)   beta - mean * scale
    w_ref:     (C, D)   Linear weight in native layout (D on the lane axis)
    feat_ref:  (B, D)   BN output (f32)
    out_ref:   (B, C)   logits (f32)
    """
    feat = x_ref[...] * scale_ref[...] + bias_ref[...]        # VPU affine
    feat_ref[...] = feat                                       # lane-dense store
    # feat @ W.T : contract D (last dim of both operands) on the MXU.
    # Any in-VMEM relayout of the (C, D) tile rides the idle XLU slot.
    out_ref[...] = lax.dot_general(
        feat, w_ref[...],
        dimension_numbers=(((1,), (1,)), ((), ())),
        preferred_element_type=jnp.float32)


def prepare_classifier_params(params):
    """One-time (model-load) prep: fold eval-mode BN into affine; keep W native."""
    gamma = params["bn_gamma"].astype(jnp.float32)
    beta = params["bn_beta"].astype(jnp.float32)
    mean = params["bn_mean"].astype(jnp.float32)
    var = params["bn_var"].astype(jnp.float32)
    scale = gamma / jnp.sqrt(var + _BN_EPS)                    # (P, D)
    bias = beta - mean * scale                                 # (P, D)
    p, d = scale.shape
    return {
        "scale": scale.reshape(p, 1, d),
        "bias": bias.reshape(p, 1, d),
        "w": params["cls_w"].astype(jnp.float32),              # (P, C, D)
    }


@jax.jit
def _classifier_parts(x, prepped):
    """x: (B, D, P) f32. Returns (pfeat, feat, out): (P,B,D), (P,B,D), (P,B,C)."""
    b, d, p = x.shape
    c = prepped["w"].shape[1]

    # Part-major, channels-last layout (needed for pfeat anyway): D on lanes.
    x_parts = jnp.transpose(x, (2, 0, 1))                      # (P, B, D)

    feat, out = pl.pallas_call(
        _bn_linear_kernel,
        out_shape=(
            jax.ShapeDtypeStruct((p, b, d), jnp.float32),
            jax.ShapeDtypeStruct((p, b, c), jnp.float32),
        ),
        grid=(p,),
        in_specs=[
            pl.BlockSpec((None, b, d), lambda i: (i, 0, 0)),   # x part
            pl.BlockSpec((None, 1, d), lambda i: (i, 0, 0)),   # scale
            pl.BlockSpec((None, 1, d), lambda i: (i, 0, 0)),   # bias
            pl.BlockSpec((None, c, d), lambda i: (i, 0, 0)),   # W (native layout)
        ],
        out_specs=(
            pl.BlockSpec((None, b, d), lambda i: (i, 0, 0)),   # feat
            pl.BlockSpec((None, b, c), lambda i: (i, 0, 0)),   # out
        ),
        compiler_params=pltpu.CompilerParams(
            dimension_semantics=("parallel",)),
    )(x_parts, prepped["scale"], prepped["bias"], prepped["w"])

    return x_parts, feat, out


def classifier_forward(x, prepped, pfeat_all, feat_all, out_all):
    """Mirrors classifier.forward: extends the three result lists per part."""
    pfeat, feat, out = _classifier_parts(x, prepped)
    for i in range(pfeat.shape[0]):
        pfeat_all.append(pfeat[i])     # == torch.squeeze(x[:, :, i])
        feat_all.append(feat[i])
        out_all.append(out[i])
    return pfeat_all, feat_all, out_all


def _reference_forward(x, params):
    """Pure-JAX reference replicating the PyTorch module (eval-mode BN)."""
    p = x.shape[2]
    pf, ft, ot = [], [], []
    for i in range(p):
        xi = x[:, :, i]
        inv = 1.0 / jnp.sqrt(params["bn_var"][i] + _BN_EPS)
        feat = (xi - params["bn_mean"][i]) * inv * params["bn_gamma"][i] \
            + params["bn_beta"][i]
        out = feat @ params["cls_w"][i].T
        pf.append(xi)
        ft.append(feat)
        ot.append(out)
    return pf, ft, ot


if __name__ == "__main__":
    key = jax.random.PRNGKey(0)
    k_x, k_g, k_m, k_v, k_w = jax.random.split(key, 5)

    # input_dim is hard-coded to 2048 in the PyTorch module; batch / parts /
    # class count kept small.
    B, D, P, C = 4, 2048, 3, 75

    x = jax.random.normal(k_x, (B, D, P), dtype=jnp.float32)
    params = {
        # weights_init_kaiming on BatchNorm1d: weight ~ N(1, 0.01), bias = 0
        "bn_gamma": 1.0 + 0.01 * jax.random.normal(k_g, (P, D), dtype=jnp.float32),
        "bn_beta": jnp.zeros((P, D), dtype=jnp.float32),
        # non-trivial running stats to exercise the BN folding
        "bn_mean": 0.1 * jax.random.normal(k_m, (P, D), dtype=jnp.float32),
        "bn_var": jnp.abs(jax.random.normal(k_v, (P, D), dtype=jnp.float32)) + 0.5,
        # weights_init_classifier on Linear: weight ~ N(0, 0.001), no bias
        "cls_w": 0.001 * jax.random.normal(k_w, (P, C, D), dtype=jnp.float32),
    }

    prepped = prepare_classifier_params(params)   # one-time, model-load cost

    pfeat_all, feat_all, out_all = classifier_forward(x, prepped, [], [], [])
    jax.block_until_ready(out_all[-1])

    pf_ref, ft_ref, ot_ref = _reference_forward(x, params)
    assert len(pfeat_all) == len(feat_all) == len(out_all) == P
    for i in range(P):
        assert pfeat_all[i].shape == (B, D)
        assert feat_all[i].shape == (B, D)
        assert out_all[i].shape == (B, C)
        assert jnp.allclose(pfeat_all[i], pf_ref[i], atol=1e-5, rtol=1e-5), i
        assert jnp.allclose(feat_all[i], ft_ref[i], atol=1e-4, rtol=1e-4), \
            float(jnp.max(jnp.abs(feat_all[i] - ft_ref[i])))
        assert jnp.allclose(out_all[i], ot_ref[i], atol=1e-4, rtol=1e-4), \
            float(jnp.max(jnp.abs(out_all[i] - ot_ref[i])))

    print("KERNEL_OK")
</pallas_src>

<mosaic_0001>
module attributes {stable_mosaic.version = 11 : i64} {
  func.func @_bn_linear_kernel(%arg0: i32, %arg1: memref<1x4x2048xf32, #tpu.memory_space<vmem>>, %arg2: memref<1x1x2048xf32, #tpu.memory_space<vmem>>, %arg3: memref<1x1x2048xf32, #tpu.memory_space<vmem>>, %arg4: memref<1x75x2048xf32, #tpu.memory_space<vmem>>, %arg5: memref<1x4x2048xf32, #tpu.memory_space<vmem>>, %arg6: memref<1x4x75xf32, #tpu.memory_space<vmem>>) attributes {dimension_semantics = [#tpu.dimension_semantics<parallel>], iteration_bounds = array<i64: 3>, scalar_prefetch = 0 : i64, scratch_operands = 0 : i64, tpu.core_type = #tpu.core_type<tc>, window_params = [{transform_indices = @transform_0, window_bounds = array<i64: 1, 4, 2048>}, {transform_indices = @transform_1, window_bounds = array<i64: 1, 1, 2048>}, {transform_indices = @transform_2, window_bounds = array<i64: 1, 1, 2048>}, {transform_indices = @transform_3, window_bounds = array<i64: 1, 75, 2048>}, {transform_indices = @transform_4, window_bounds = array<i64: 1, 4, 2048>}, {transform_indices = @transform_5, window_bounds = array<i64: 1, 4, 75>}]} {
    %c0 = arith.constant 0 : index
    %c0_0 = arith.constant 0 : index
    %c0_1 = arith.constant 0 : index
    %0 = vector.load %arg1[%c0, %c0_0, %c0_1] : memref<1x4x2048xf32, #tpu.memory_space<vmem>>, vector<1x4x2048xf32>
    %1 = vector.shape_cast %0 : vector<1x4x2048xf32> to vector<4x2048xf32>
    %c0_2 = arith.constant 0 : index
    %c0_3 = arith.constant 0 : index
    %c0_4 = arith.constant 0 : index
    %2 = vector.load %arg2[%c0_2, %c0_3, %c0_4] : memref<1x1x2048xf32, #tpu.memory_space<vmem>>, vector<1x1x2048xf32>
    %3 = vector.shape_cast %2 : vector<1x1x2048xf32> to vector<1x2048xf32>
    %4 = vector.broadcast %3 : vector<1x2048xf32> to vector<4x2048xf32>
    %5 = arith.mulf %1, %4 : vector<4x2048xf32>
    %c0_5 = arith.constant 0 : index
    %c0_6 = arith.constant 0 : index
    %c0_7 = arith.constant 0 : index
    %6 = vector.load %arg3[%c0_5, %c0_6, %c0_7] : memref<1x1x2048xf32, #tpu.memory_space<vmem>>, vector<1x1x2048xf32>
    %7 = vector.shape_cast %6 : vector<1x1x2048xf32> to vector<1x2048xf32>
    %8 = vector.broadcast %7 : vector<1x2048xf32> to vector<4x2048xf32>
    %9 = arith.addf %5, %8 : vector<4x2048xf32>
    %c0_8 = arith.constant 0 : index
    %c0_9 = arith.constant 0 : index
    %c0_10 = arith.constant 0 : index
    %10 = vector.load %arg5[%c0_8, %c0_9, %c0_10] : memref<1x4x2048xf32, #tpu.memory_space<vmem>>, vector<1x4x2048xf32>
    %11 = vector.shape_cast %10 : vector<1x4x2048xf32> to vector<4x2048xf32>
    %12 = vector.shape_cast %9 : vector<4x2048xf32> to vector<1x4x2048xf32>
    tpu.vector_store %arg5[%c0_8, %c0_9, %c0_10], %12 {strides = array<i32>} : memref<1x4x2048xf32, #tpu.memory_space<vmem>>, vector<1x4x2048xf32>,
    %c0_11 = arith.constant 0 : index
    %c0_12 = arith.constant 0 : index
    %c0_13 = arith.constant 0 : index
    %13 = vector.load %arg4[%c0_11, %c0_12, %c0_13] : memref<1x75x2048xf32, #tpu.memory_space<vmem>>, vector<1x75x2048xf32>
    %14 = vector.shape_cast %13 : vector<1x75x2048xf32> to vector<75x2048xf32>
    %cst = arith.constant dense<0.000000e+00> : vector<4x75xf32>
    %15 = tpu.matmul %9, %14, %cst {dimension_numbers = #tpu.dot_dimension_numbers<[1], [1], [0], [0], [0, 0, 1, 0], [], []>} : vector<4x2048xf32>, vector<75x2048xf32>, vector<4x75xf32> -> vector<4x75xf32>
    %c0_14 = arith.constant 0 : index
    %c0_15 = arith.constant 0 : index
    %c0_16 = arith.constant 0 : index
    %16 = vector.load %arg6[%c0_14, %c0_15, %c0_16] : memref<1x4x75xf32, #tpu.memory_space<vmem>>, vector<1x4x75xf32>
    %17 = vector.shape_cast %16 : vector<1x4x75xf32> to vector<4x75xf32>
    %18 = vector.shape_cast %15 : vector<4x75xf32> to vector<1x4x75xf32>
    tpu.vector_store %arg6[%c0_14, %c0_15, %c0_16], %18 {strides = array<i32>} : memref<1x4x75xf32, #tpu.memory_space<vmem>>, vector<1x4x75xf32>,
    return
  }
  func.func @transform_0(%arg0: i32) -> (i32, i32, i32) {
    %c0_i32 = arith.constant 0 : i32
    %c0_i32_0 = arith.constant 0 : i32
    %c0_i32_1 = arith.constant 0 : i32
    return %arg0, %c0_i32, %c0_i32_0 : i32, i32, i32
  }
  func.func @transform_1(%arg0: i32) -> (i32, i32, i32) {
    %c0_i32 = arith.constant 0 : i32
    %c0_i32_0 = arith.constant 0 : i32
    %c0_i32_1 = arith.constant 0 : i32
    return %arg0, %c0_i32, %c0_i32_0 : i32, i32, i32
  }
  func.func @transform_2(%arg0: i32) -> (i32, i32, i32) {
    %c0_i32 = arith.constant 0 : i32
    %c0_i32_0 = arith.constant 0 : i32
    %c0_i32_1 = arith.constant 0 : i32
    return %arg0, %c0_i32, %c0_i32_0 : i32, i32, i32
  }
  func.func @transform_3(%arg0: i32) -> (i32, i32, i32) {
    %c0_i32 = arith.constant 0 : i32
    %c0_i32_0 = arith.constant 0 : i32
    %c0_i32_1 = arith.constant 0 : i32
    return %arg0, %c0_i32, %c0_i32_0 : i32, i32, i32
  }
  func.func @transform_4(%arg0: i32) -> (i32, i32, i32) {
    %c0_i32 = arith.constant 0 : i32
    %c0_i32_0 = arith.constant 0 : i32
    %c0_i32_1 = arith.constant 0 : i32
    return %arg0, %c0_i32, %c0_i32_0 : i32, i32, i32
  }
  func.func @transform_5(%arg0: i32) -> (i32, i32, i32) {
    %c0_i32 = arith.constant 0 : i32
    %c0_i32_0 = arith.constant 0 : i32
    %c0_i32_1 = arith.constant 0 : i32
    return %arg0, %c0_i32, %c0_i32_0 : i32, i32, i32
  }
}

</mosaic_0001>

<bundles_post_ra>
// kernel: _classifier_parts.1
= control target key start
LH: loop header
LB: loop body
LE: loop exit
PB: predicated region body
PF: predicated region fallthrough
CT: control target
= control target key end

     0   :  { %s2050_s0 = inlined_call_operand.hbm [shape: f32[3,4,2048], index: 0, kind: input, shape index: {}]   ;;  %s2051_s1 = inlined_call_operand.hbm [shape: f32[3,1,2048], index: 1, kind: input, shape index: {}]   ;;  %s2052_s2 = inlined_call_operand.hbm [shape: f32[3,1,2048], index: 2, kind: input, shape index: {}]   ;;  %s2053_s3 = inlined_call_operand.hbm [shape: f32[3,75,2048], index: 3, kind: input, shape index: {}]   ;;  %s2054_s4 = inlined_call_operand.hbm [shape: f32[3,4,2048], index: 4, kind: output, shape index: {0}]   ;;  %s2055_s5 = inlined_call_operand.hbm [shape: f32[3,4,75], index: 5, kind: output, shape index: {1}]  }
   0x1   :  { %2060 = sst [smem:[#allocation21_spill]] %s2051_s1 }
   0x2   :  { %11 = vsyncpa [#allocation3], 0 }
   0x3   :  { %13 = vsyncpa [#allocation3 + $0x1], 0 }
   0x4   :  { %14 = vsyncpa [#allocation6], 0 }
   0x5   :  { %16 = vsyncpa [#allocation6 + $0x1], 0 }
   0x6   :  { %17 = vsyncpa [#allocation9], 0 }
   0x7   :  { %19 = vsyncpa [#allocation9 + $0x1], 0 }
   0x8   :  { %20 = vsyncpa [#allocation4], 0 }
   0x9   :  { %22 = vsyncpa [#allocation4 + $0x1], 0 }
   0xa   :  { %23 = vsyncpa [#allocation12], 0 }
   0xb   :  { %25 = vsyncpa [#allocation12 + $0x1], 0  ;;  %s1587_s18 = smov 0   ;;  %s1589_s19 = smov 0  }
   0xc   :  { %s1591_s20 = smov 0   ;;  %s1593_s21 = smov 0  }
   0xd LB: > { %2061 = sst [smem:[#allocation18_spill]] %s1549_s20  ;;  %s1608_s22 = sadd.s32 4294967295, %s1553_s21   ;;  %s1553_s21 = sphi %s1593_s21, %s2071_s21   ;;  %s1549_s20 = sphi %s1591_s20, %s2073_s20   ;;  %s1545_s19 = sphi %s1589_s19, %s2075_s19   ;;  %s1541_s18 = sphi %s1587_s18, %s2074_s18  }
   0xe   : > { %s1230_s23 = sadd.s32 4294967294, %s1553_s21   ;;  %s1612_s24 = sadd.s32 1, %s1553_s21  }
   0xf   : > { %2062 = sst [smem:[#allocation19_spill]] %s1612_s24  ;;  %s38_s25 = sadd.s32 1, %s1549_s20 }
  0x10   : > { %s35_s26 = ssub.s32 %s1553_s21, %s1612_s24  ;;  %p45_p0 = scmp.ne.s32.totalorder %s1549_s20, %s1545_s19 }
  0x11   : > { %p36_p1 = scmp.eq.s32.totalorder %s35_s26, 0  ;;  %p46_p2 = scmp.eq.s32.totalorder %s1553_s21, 0 }
  0x12   : > { %p51_p3 = scmp.ne.s32.totalorder %s1545_s19, %s1541_s18  ;;  %p52_p4 = scmp.eq.s32.totalorder %s1608_s22, 0 }
  0x13   : > { %s1624_s27 = scalar_select %p36_p1, %s1549_s20, %s38_s25  }
  0x14   : > { %p47_p5 = por %p46_p2, %p45_p0  ;;  %p1626_p6 = por %p52_p4, %p51_p3 }
  0x15   : > { %2063 = sst [smem:[#allocation20_spill]] %s1624_s27  ;;  %p153_p7 = scmp.eq.s32.totalorder %s1608_s22, 2 }
  0x16   : > { %p159_p8 = scmp.eq.s32.totalorder %s1230_s23, 2  ;;  %p1291_p9 = scmp.lt.s32.totalorder %s1553_s21, 3 }
  0x17   : > { %p1632_p10 = por %p153_p7, %p45_p0  ;;  %s1641_s6 = sand.u32 1, %s1549_s20  }
  0x18   : > { %p1636_p11 = por %p159_p8, %p51_p3  ;;  %p1643_p12 = pnand %p1291_p9, %p47_p5 }
  0x19   : > { %s225_s8 = sand.u32 1, %s1553_s21   ;;  %s2056_s9 = sshll.u32 %s1641_s6, 4 }
  0x1a   : > { %s1237_s10 = sshll.u32 %s1553_s21, 4  ;;  %s2068_s1 = sld [smem:[#allocation21_spill]] }
  0x1b   : > { %s229_s14 = scalar_lea.vmem [#allocation5], %s2056_s9  ;;  %s1655_s17 = scalar_lea.sflag [#allocation6], %s225_s8 }
  0x1c   : > { %s237_s15 = sshll.u32 %s229_s14, 4  ;;  %p1331_p0 = pneg %p1643_p12  ;;  %s238_s15 = int_to_ptr.vmem [resolvable:$true] %s237_s15 }
  0x20   : > { %s233_s13 = scalar_lea.hbm %s2068_s1, %s1237_s10  ;;  %s1334_s12 = scalar_lea.hbm %s2068_s1, 48 }
  0x21   : > { %s235_s16 = sshll.u32 %s233_s13, 4  ;;  %s236_s16 = int_to_ptr.hbm [resolvable:$true] %s235_s16 }
  0x22   : > { %s1327_s23 = sshra.s32 %s236_s16, 4  ;;  %s1328_s23 = int_to_ptr.hbm [resolvable:$true] %s1327_s23 }
  0x23   : > { %s1329_s25 = scalar_lea.hbm %s1328_s23, 16  ;;  %p1335_p3 = scmp.lt.s32.totalorder %s1328_s23, %s2068_s1 }
  0x24   : > { %p1330_p13 = scmp.ne.s32.totalorder %s1328_s23, %s1329_s25  ;;  %p1336_p4 = scmp.lt.s32.totalorder %s1334_s12, %s1329_s25 }
  0x26   : > { %p1332_p1 = pnand %p1331_p0, %p1330_p13  ;;  %p1337_p5 = por %p1336_p4, %p1335_p3 }
  0x28   : > { %p1333_p2 = pneg %p1332_p1 }
  0x2a   : > { %p1338_p7 = pnand %p1337_p5, %p1333_p2 }
  0x2c   : > { %1341 = shalt.err (!%p1338_p7)
}
  0x2d   : > { %1277 = dma.hbm_to_vmem [thread:$0]  (!%p1643_p12), %s236_s16, 256, %s238_s15, %s1655_s17  }
  0x2e   : > { %s252_s11 = scalar_lea.hbm %s2052_s2, %s1237_s10  ;;  %p1241_p8 = scmp.ge.s32.totalorder %s1553_s21, 1 }
  0x2f   : > { %p283_p9 = scmp.lt.s32.totalorder %s1553_s21, 4  ;;  %s1233_s23 = sshll.u32 %s1641_s6, 6 }
  0x30   : > { %s1254_s25 = sshll.u32 %s1553_s21, 6  ;;  %s209_s1 = scalar_lea.vmem [#allocation2], %s1233_s23 }
  0x31   : > { %p1678_p13 = pnand %p1241_p8, %p283_p9  ;;  %s214_s9 = scalar_lea.hbm %s2050_s0, %s1254_s25 }
  0x32   : > { %s218_s27 = sshll.u32 %s209_s1, 4  ;;  %s216_s15 = sshll.u32 %s214_s9, 4  ;;  %s219_s27 = int_to_ptr.vmem [resolvable:$true] %s218_s27  ;;  %s217_s15 = int_to_ptr.hbm [resolvable:$true] %s216_s15 }
  0x33   : > { %s254_s16 = sshll.u32 %s252_s11, 4  ;;  %s206_s10 = scalar_lea.sflag [#allocation3], %s1641_s6  ;;  %s255_s16 = int_to_ptr.hbm [resolvable:$true] %s254_s16 }
  0x34   : > { %s1357_s8 = sshra.s32 %s217_s15, 4  ;;  %s1364_s14 = scalar_lea.hbm %s2050_s0, 192  ;;  %s1358_s8 = int_to_ptr.hbm [resolvable:$true] %s1357_s8 }
  0x35   : > { %s1359_s26 = scalar_lea.hbm %s1358_s8, 64  ;;  %p1365_p4 = scmp.lt.s32.totalorder %s1358_s8, %s2050_s0 }
  0x36   : > { %p1360_p1 = scmp.ne.s32.totalorder %s1358_s8, %s1359_s26  ;;  %p1366_p5 = scmp.lt.s32.totalorder %s1364_s14, %s1359_s26 }
  0x38   : > { %p1362_p2 = pnand %p1360_p1, %p1331_p0  ;;  %p1367_p7 = por %p1366_p5, %p1365_p4 }
  0x3a   : > { %p1363_p3 = pneg %p1362_p2 }
  0x3c   : > { %p1368_p8 = pnand %p1367_p7, %p1363_p3 }
  0x3e   : > { %1371 = shalt.err (!%p1368_p8)
}
  0x3f   : > { %1274 = dma.hbm_to_vmem [thread:$0]  (!%p1643_p12), %s217_s15, 1024, %s219_s27, %s206_s10  }
  0x40   : > { %s2070_s1 = sshll.u32 %s1641_s6, 4  ;;  %s1387_s20 = sshra.s32 %s255_s16, 4  ;;  %s1388_s20 = int_to_ptr.hbm [resolvable:$true] %s1387_s20 }
  0x41   : > { %s248_s9 = scalar_lea.vmem [#allocation7], %s2070_s1  ;;  %s1389_s24 = scalar_lea.hbm %s1388_s20, 16 }
  0x42   : > { %s256_s11 = sshll.u32 %s248_s9, 4  ;;  %p1390_p9 = scmp.ne.s32.totalorder %s1388_s20, %s1389_s24  ;;  %s257_s11 = int_to_ptr.vmem [resolvable:$true] %s256_s11 }
  0x43   : > { %s1394_s26 = scalar_lea.hbm %s2052_s2, 48  ;;  %p1395_p3 = scmp.lt.s32.totalorder %s1388_s20, %s2052_s2 }
  0x44   : > { %p1392_p1 = pnand %p1390_p9, %p1331_p0  ;;  %p1396_p4 = scmp.lt.s32.totalorder %s1394_s26, %s1389_s24 }
  0x46   : > { %p1393_p2 = pneg %p1392_p1  ;;  %p1397_p5 = por %p1396_p4, %p1395_p3 }
  0x48   : > { %p1398_p7 = pnand %p1397_p5, %p1393_p2 }
  0x4a   : > { %1401 = shalt.err (!%p1398_p7)
}
  0x4b   : > { %1280 = dma.hbm_to_vmem [thread:$0]  (!%p1643_p12), %s255_s16, 256, %s257_s11, %s1655_s17  }
  0x4c   : > { %s1256_s27 = smul.u32 1280, %s1641_s6  ;;  %s264_s13 = scalar_lea.sflag [#allocation9], %s1641_s6 }
  0x4d   : > { %s1257_s15 = smul.u32 1280, %s1553_s21  ;;  %s1424_s11 = scalar_lea.hbm %s2053_s3, 3840 }
  0x4e   : > { %s267_s9 = scalar_lea.vmem [#allocation8], %s1256_s27 }
  0x4f   : > { %s272_s1 = scalar_lea.hbm %s2053_s3, %s1257_s15  ;;  %s275_s20 = sshll.u32 %s267_s9, 4  ;;  %s276_s20 = int_to_ptr.vmem [resolvable:$true] %s275_s20 }
  0x50   : > { %s273_s24 = sshll.u32 %s272_s1, 4  ;;  %s274_s24 = int_to_ptr.hbm [resolvable:$true] %s273_s24 }
  0x51   : > { %s1417_s8 = sshra.s32 %s274_s24, 4  ;;  %s1418_s8 = int_to_ptr.hbm [resolvable:$true] %s1417_s8 }
  0x52   : > { %s1419_s26 = scalar_lea.hbm %s1418_s8, 1280  ;;  %p1425_p2 = scmp.lt.s32.totalorder %s1418_s8, %s2053_s3 }
  0x53   : > { %p1420_p8 = scmp.ne.s32.totalorder %s1418_s8, %s1419_s26  ;;  %p1426_p3 = scmp.lt.s32.totalorder %s1424_s11, %s1419_s26 }
  0x55   : > { %p1422_p9 = pnand %p1420_p8, %p1331_p0  ;;  %p1427_p4 = por %p1426_p3, %p1425_p2 }
  0x57   : > { %p1423_p1 = pneg %p1422_p9 }
  0x59   : > { %p1428_p5 = pnand %p1427_p4, %p1423_p1 }
  0x5b   : > { %1431 = shalt.err (!%p1428_p5)
}
  0x5c   : > { %s1555_s6 = smov 2048   ;;  %s1556_s27 = smov 128  }
  0x5d   : > { %1283 = dma.hbm_to_vmem [thread:$0]  (!%p1643_p12), %s274_s24, 20480, %s276_s20, %s264_s13, %s1555_s6, %s1555_s6, %s1556_s27  }
  0x5e   : > { %287 = sbr.rel (%p1678_p13) target bundleno = 406 (0x196), region = 36  ;;  %s1731_s15 = sand.u32 (!%p1678_p13), 1, %s1545_s19  }
  0x5f   : > { %s1242_s10 = sshll.u32 (!%p1678_p13), %s1731_s15, 6  ;;  %s290_s23 = scalar_lea.sflag (!%p1678_p13), [#allocation3], %s1731_s15 }
  0x60   : > { %s1737_s1 = scalar_lea.vmem (!%p1678_p13), [#allocation2], %s1242_s10 }
  0x63   : > { %1520 = dma.done.wait (%p1626_p6), %s290_s23, 1024  }
  0x64   : > { %1522 = vsyncadd (%p1626_p6), %s290_s23, 4294966272  ;;  %s299_s7 = sand.u32 1, %s1608_s22   ;;  %s1243_s12 = sshll.u32 %s1731_s15, 4 }
  0x65   : > { %s300_s9 = scalar_lea.sflag [#allocation6], %s299_s7  ;;  %s1745_s20 = scalar_lea.vmem [#allocation5], %s1243_s12 }
  0x66   : > { %1524 = dma.done.wait (%p1626_p6), %s300_s9, 512  }
  0x67   : > { %1526 = vsyncadd (%p1626_p6), %s300_s9, 4294966784  ;;  %s1258_s24 = smul.u32 1280, %s1731_s15  ;;  %s1752_s13 = scalar_lea.vmem [#allocation7], %s1243_s12 }
  0x68   : > { %s320_s8 = scalar_lea.sflag [#allocation9], %s1731_s15 }
  0x69   : > { %s1755_s26 = scalar_lea.vmem [#allocation8], %s1258_s24 }
  0x6a   : > { %1528 = dma.done.wait (%p1626_p6), %s320_s8, 20480  }
  0x6b   : > { %1530 = vsyncadd (%p1626_p6), %s320_s8, 4294946816  ;;  %v636_v0 = vld [vmem:[%s1755_s26 + $0x480] sm:$0x7]  ;;  %v638_v1 = vld [vmem:[%s1755_s26 + $0x490] sm:$0x7]  ;;  %vm407_vm0 = vcmask 1043456  }
  0x6c   : > { %v637_v2 = vld [vmem:[%s1755_s26 + $0x488] sm:$0x7]  ;;  %709 = vmatpush.xpose.msra.mxu0 %v636_v0  ;;  %749 = vmatpush.xpose.msra.mxu2 %v638_v1  ;;  %v639_v3 = vld [vmem:[%s1755_s26 + $0x498] sm:$0x7]  ;;  %v620_v4 = vld [vmem:[%s1755_s26 + $0x400] sm:$0xff]  ;;  %s1823_s28 = scalar_lea.vmem [#allocation10], %s1242_s10 }
  0x6d   : > { %729 = vmatpush.xpose.msra.mxu1 %v637_v2  ;;  %769 = vmatpush.xpose.msra.mxu3 %v639_v3  ;;  %v622_v5 = vld [vmem:[%s1755_s26 + $0x410] sm:$0xff]  ;;  %v621_v6 = vld [vmem:[%s1755_s26 + $0x408] sm:$0xff]  ;;  %v623_v7 = vld [vmem:[%s1755_s26 + $0x418] sm:$0xff]  ;;  %s1255_s17 = sshll.u32 %s1608_s22, 6  ;;  %s1044_s25 = sshll.u32 %s1823_s28, 4  ;;  %s1045_s25 = int_to_ptr.vmem [resolvable:$true] %s1044_s25 }
  0x6e   : > { %v604_v8 = vld [vmem:[%s1755_s26 + $0x380] sm:$0xff]  ;;  %v606_v9 = vld [vmem:[%s1755_s26 + $0x390] sm:$0xff]  ;;  %v605_v10 = vld [vmem:[%s1755_s26 + $0x388] sm:$0xff]  ;;  %s1042_s14 = scalar_lea.hbm %s2054_s4, %s1255_s17  ;;  %s1026_s27 = scalar_lea.sflag [#allocation4], %s1731_s15 }
  0x6f   : > { %v607_v11 = vld [vmem:[%s1755_s26 + $0x398] sm:$0xff]  ;;  %v588_v12 = vld [vmem:[%s1755_s26 + $0x300] sm:$0xff]  ;;  %v590_v13 = vld [vmem:[%s1755_s26 + $0x310] sm:$0xff]  ;;  %s1046_s6 = sshll.u32 %s1042_s14, 4  ;;  %s1467_s12 = scalar_lea.hbm %s2054_s4, 192  ;;  %s1047_s6 = int_to_ptr.hbm [resolvable:$true] %s1046_s6 }
  0x70   : > { %710 = vmatpush.xpose.msra.mxu0 %v620_v4  ;;  %750 = vmatpush.xpose.msra.mxu2 %v622_v5  ;;  %v589_v14 = vld [vmem:[%s1755_s26 + $0x308] sm:$0xff]  ;;  %v591_v15 = vld [vmem:[%s1755_s26 + $0x318] sm:$0xff]  ;;  %v572_v16 = vld [vmem:[%s1755_s26 + $0x280] sm:$0xff]  ;;  %s1461_s10 = sshra.s32 %s1047_s6, 4  ;;  %s1462_s10 = int_to_ptr.hbm [resolvable:$true] %s1461_s10 }
  0x71   : > { %730 = vmatpush.xpose.msra.mxu1 %v621_v6  ;;  %770 = vmatpush.xpose.msra.mxu3 %v623_v7  ;;  %v574_v17 = vld [vmem:[%s1755_s26 + $0x290] sm:$0xff]  ;;  %v573_v18 = vld [vmem:[%s1755_s26 + $0x288] sm:$0xff]  ;;  %v575_v19 = vld [vmem:[%s1755_s26 + $0x298] sm:$0xff]  ;;  %s1463_s23 = scalar_lea.hbm %s1462_s10, 64  ;;  %p1468_p13 = scmp.lt.s32.totalorder %s1462_s10, %s2054_s4 }
  0x72   : > { %v556_v20 = vld [vmem:[%s1755_s26 + $0x200] sm:$0xff]  ;;  %v558_v21 = vld [vmem:[%s1755_s26 + $0x210] sm:$0xff]  ;;  %v557_v22 = vld [vmem:[%s1755_s26 + $0x208] sm:$0xff]  ;;  %p1464_p6 = scmp.ne.s32.totalorder %s1462_s10, %s1463_s23  ;;  %p1469_p7 = scmp.lt.s32.totalorder %s1467_s12, %s1463_s23 }
  0x73   : > { %v559_v23 = vld [vmem:[%s1755_s26 + $0x218] sm:$0xff]  ;;  %v540_v24 = vld [vmem:[%s1755_s26 + $0x180] sm:$0xff]  ;;  %v542_v25 = vld [vmem:[%s1755_s26 + $0x190] sm:$0xff] }
  0x74   : > { %711 = vmatpush.xpose.msra.mxu0 %v604_v8  ;;  %751 = vmatpush.xpose.msra.mxu2 %v606_v9  ;;  %v541_v26 = vld [vmem:[%s1755_s26 + $0x188] sm:$0xff]  ;;  %v543_v27 = vld [vmem:[%s1755_s26 + $0x198] sm:$0xff]  ;;  %v1790_v28 = vld [vmem:[%s1745_s20] sm:$0xff]  ;;  %p1465_p12 = pnand %p1464_p6, %p1632_p10  ;;  %p1470_p8 = por %p1469_p7, %p1468_p13 }
  0x75   : > { %731 = vmatpush.xpose.msra.mxu1 %v605_v10  ;;  %771 = vmatpush.xpose.msra.mxu3 %v607_v11  ;;  %v386_v29 = vperm.slane %v1790_v28, 3  ;;  %v1794_v30 = vld [vmem:[%s1752_s13] sm:$0xff]  ;;  %v385_v33 = vperm.slane %v1790_v28, 2  ;;  %v384_v36 = vperm.slane %v1790_v28, 1  ;;  %v525_v37 = vld [vmem:[%s1755_s26 + $0x108] sm:$0xff]  ;;  %v527_v38 = vld [vmem:[%s1755_s26 + $0x118] sm:$0xff] }
  0x76   : > { %v524_v31 = vld [vmem:[%s1755_s26 + $0x100] sm:$0xff]  ;;  %v526_v32 = vld [vmem:[%s1755_s26 + $0x110] sm:$0xff]  ;;  %v439_v35 = vperm.slane %v1794_v30, 3  ;;  %v372_v39 = vld [vmem:[%s1737_s1 + $0x8] sm:$0xff]  ;;  %v438_v41 = vperm.slane %v1794_v30, 2  ;;  %v383_v43 = vperm.slane %v1790_v28, 0  ;;  %p1466_p0 = pneg %p1465_p12 }
  0x77   : > { %v400_v34 = vrot.slane %v386_v29, 4  ;;  %v399_v45 = vrot.slane %v384_v36, 4  ;;  %v437_v46 = vperm.slane %v1794_v30, 1  ;;  %v508_v47 = vld [vmem:[%s1755_s26 + $0x80] sm:$0xff]  ;;  %v510_v48 = vld [vmem:[%s1755_s26 + $0x90] sm:$0xff]  ;;  %v436_v51 = vperm.slane %v1794_v30, 0 }
  0x78   : > { %712 = vmatpush.xpose.msra.mxu0 %v588_v12  ;;  %752 = vmatpush.xpose.msra.mxu2 %v590_v13  ;;  %v453_v42 = vrot.slane %v439_v35, 4  ;;  %v371_v50 = vld [vmem:[%s1737_s1] sm:$0xff]  ;;  %v509_v52 = vld [vmem:[%s1755_s26 + $0x88] sm:$0xff]  ;;  %v511_v53 = vld [vmem:[%s1755_s26 + $0x98] sm:$0xff]  ;;  %v390_v58 = vperm.slane %v1790_v28, 7  ;;  %v389_v0 = vperm.slane %v1790_v28, 6  ;;  %p1471_p9 = pnand %p1470_p8, %p1466_p0 }
  0x79   : > { %732 = vmatpush.xpose.msra.mxu1 %v589_v14  ;;  %772 = vmatpush.xpose.msra.mxu3 %v591_v15  ;;  %v409_v40 = vsel %vm407_vm0, %v385_v33, %v400_v34  ;;  %v408_v55 = vsel %vm407_vm0, %v383_v43, %v399_v45  ;;  %v452_v56 = vrot.slane %v437_v46, 4  ;;  %v492_v59 = vld [vmem:[%s1755_s26] sm:$0xff]  ;;  %v494_v60 = vld [vmem:[%s1755_s26 + $0x10] sm:$0xff]  ;;  %v443_v2 = vperm.slane %v1794_v30, 7  ;;  %v493_v4 = vld [vmem:[%s1755_s26 + $0x8] sm:$0xff] }
  0x7a   : > { %v425_v44 = vmul.f32 %v409_v40, %v372_v39  ;;  %v461_v49 = vsel %vm407_vm0, %v438_v41, %v453_v42  ;;  %v424_v57 = vmul.f32 %v408_v55, %v371_v50  ;;  %v640_v62 = vld [vmem:[%s1755_s26 + $0x4a0] sm:$0x7]  ;;  %v402_v1 = vrot.slane %v390_v58, 4  ;;  %v642_v3 = vld [vmem:[%s1755_s26 + $0x4b0] sm:$0x7]  ;;  %v495_v7 = vld [vmem:[%s1755_s26 + $0x18] sm:$0xff] }
  0x7b   : > { %v460_v61 = vsel %vm407_vm0, %v436_v51, %v452_v56  ;;  %v641_v5 = vld [vmem:[%s1755_s26 + $0x4a8] sm:$0x7]  ;;  %v388_v6 = vperm.slane %v1790_v28, 5  ;;  %v374_v8 = vld [vmem:[%s1737_s1 + $0x18] sm:$0xff]  ;;  %v442_v10 = vperm.slane %v1794_v30, 6  ;;  %v455_v11 = vrot.slane %v443_v2, 4 }
  0x7c   : > { %713 = vmatpush.xpose.msra.mxu0 %v572_v16  ;;  %753 = vmatpush.xpose.msra.mxu2 %v574_v17  ;;  %v477_v54 = vadd.f32 %v461_v49, %v425_v44  ;;  %v476_v63 = vadd.f32 %v460_v61, %v424_v57  ;;  %v411_v9 = vsel %vm407_vm0, %v389_v0, %v402_v1  ;;  %v643_v12 = vld [vmem:[%s1755_s26 + $0x4b8] sm:$0x7]  ;;  %v387_v14 = vperm.slane %v1790_v28, 4  ;;  %v608_v29 = vld [vmem:[%s1755_s26 + $0x3a0] sm:$0xff]  ;;  %v610_v33 = vld [vmem:[%s1755_s26 + $0x3b0] sm:$0xff] }
  0x7d   : > { %733 = vmatpush.xpose.msra.mxu1 %v573_v18  ;;  %773 = vmatpush.xpose.msra.mxu3 %v575_v19  ;;  %v427_v13 = vmul.f32 %v411_v9, %v374_v8  ;;  %v401_v15 = vrot.slane %v388_v6, 4  ;;  %v441_v16 = vperm.slane %v1794_v30, 5  ;;  %v463_v17 = vsel %vm407_vm0, %v442_v10, %v455_v11  ;;  %v373_v18 = vld [vmem:[%s1737_s1 + $0x10] sm:$0xff]  ;;  %v609_v40 = vld [vmem:[%s1755_s26 + $0x3a8] sm:$0xff]  ;;  %v611_v41 = vld [vmem:[%s1755_s26 + $0x3b8] sm:$0xff] }
  0x7e   : > { %662 = vst [vmem:[#allocation1 + $0x10] ss:$2 sm:$0xff] %v477_v54  ;;  %v440_v19 = vperm.slane %v1794_v30, 4  ;;  %v1850_v30 = vld [vmem:[%s1745_s20 + $0x8] sm:$0xff]  ;;  %v592_v50 = vld [vmem:[%s1755_s26 + $0x320] sm:$0xff]  ;;  %v594_v51 = vld [vmem:[%s1755_s26 + $0x330] sm:$0xff] }
  0x7f   : > { %485 = vst [vmem:[%s1823_s28 + $0x8] sm:$0xff] %v477_v54  ;;  %v393_v35 = vperm.slane %v1850_v30, 2  ;;  %v394_v36 = vperm.slane %v1850_v30, 3  ;;  %v376_v42 = vld [vmem:[%s1737_s1 + $0x28] sm:$0xff]  ;;  %v391_v44 = vperm.slane %v1850_v30, 0  ;;  %v375_v56 = vld [vmem:[%s1737_s1 + $0x20] sm:$0xff] }
  0x80   : > { %714 = vmatpush.xpose.msra.mxu0 %v556_v20  ;;  %754 = vmatpush.xpose.msra.mxu2 %v558_v21  ;;  %660 = vst [vmem:[#allocation1] ss:$2 sm:$0xff] %v476_v63  ;;  %v624_v20 = vld [vmem:[%s1755_s26 + $0x420] sm:$0xff]  ;;  %v626_v21 = vld [vmem:[%s1755_s26 + $0x430] sm:$0xff]  ;;  %v577_v2 = vld [vmem:[%s1755_s26 + $0x2a8] sm:$0xff]  ;;  %v395_v9 = vperm.slane %v1850_v30, 4 }
  0x81   : > { %734 = vmatpush.xpose.msra.mxu1 %v557_v22  ;;  %774 = vmatpush.xpose.msra.mxu3 %v559_v23  ;;  %484 = vst [vmem:[%s1823_s28] sm:$0xff] %v476_v63  ;;  %v479_v22 = vadd.f32 %v463_v17, %v427_v13  ;;  %v410_v23 = vsel %vm407_vm0, %v387_v14, %v401_v15  ;;  %v404_v43 = vrot.slane %v394_v36, 4  ;;  %v576_v0 = vld [vmem:[%s1755_s26 + $0x2a0] sm:$0xff]  ;;  %v578_v1 = vld [vmem:[%s1755_s26 + $0x2b0] sm:$0xff]  ;;  %v579_v6 = vld [vmem:[%s1755_s26 + $0x2b8] sm:$0xff]  ;;  %v396_v10 = vperm.slane %v1850_v30, 5 }
  0x82   : > { %v426_v28 = vmul.f32 %v410_v23, %v373_v18  ;;  %v377_v17 = vld [vmem:[%s1737_s1 + $0x30] sm:$0xff] }
  0x83   : > { %666 = vst [vmem:[#allocation1 + $0x30] ss:$2 sm:$0xff] %v479_v22  ;;  %v405_v18 = vrot.slane %v396_v10, 4  ;;  %v565_v10 = vld [vmem:[%s1755_s26 + $0x248] sm:$0xff] }
  0x84   : > { %715 = vmatpush.xpose.msra.mxu0 %v540_v24  ;;  %755 = vmatpush.xpose.msra.mxu2 %v542_v25  ;;  %v454_v24 = vrot.slane %v441_v16, 4  ;;  %487 = vst [vmem:[%s1823_s28 + $0x18] sm:$0xff] %v479_v22 }
  0x85   : > { %735 = vmatpush.xpose.msra.mxu1 %v541_v26  ;;  %775 = vmatpush.xpose.msra.mxu3 %v543_v27  ;;  %v669_v25 = vld.sshfl [vmem:[#allocation1 + $0x10] sm:$0xff pattern:$0x75316420]  ;;  %v627_v27 = vld [vmem:[%s1755_s26 + $0x438] sm:$0xff] }
  0x86   : > { %v625_v26 = vld [vmem:[%s1755_s26 + $0x428] sm:$0xff]  ;;  %v670_v39 = vld.sshfl [vmem:[#allocation1 + $0x18] sm:$0xff pattern:$0x75316420] }
  0x87   : > { %v667_v34 = vld.sshfl [vmem:[#allocation1] sm:$0xff pattern:$0x75316420] }
  0x88   : > { %716 = vmatpush.xpose.msra.mxu0 %v524_v31  ;;  %756 = vmatpush.xpose.msra.mxu2 %v526_v32  ;;  %v1853_v31 = vld [vmem:[%s1752_s13 + $0x8] sm:$0xff]  ;;  %v462_v32 = vsel %vm407_vm0, %v440_v19, %v454_v24  ;;  %v560_v19 = vld [vmem:[%s1755_s26 + $0x220] sm:$0xff] }
  0x89   : > { %736 = vmatpush.xpose.msra.mxu1 %v525_v37  ;;  %776 = vmatpush.xpose.msra.mxu3 %v527_v38  ;;  %v446_v37 = vperm.slane %v1853_v31, 2  ;;  %v447_v38 = vperm.slane %v1853_v31, 3  ;;  %v478_v45 = vadd.f32 %v462_v32, %v426_v28  ;;  %v445_v49 = vperm.slane %v1853_v31, 1  ;;  %v546_v32 = vld [vmem:[%s1755_s26 + $0x1b0] sm:$0xff] }
  0x8a   : > { %v451_v8 = vperm.slane %v1853_v31, 7  ;;  %v448_v14 = vperm.slane %v1853_v31, 4  ;;  %v449_v15 = vperm.slane %v1853_v31, 5  ;;  %v674_v36 = vld.sshfl [vmem:[#allocation1 + $0x38] sm:$0xff pattern:$0x75316420] }
  0x8b   : > { %v457_v46 = vrot.slane %v447_v38, 4  ;;  %v456_v58 = vrot.slane %v445_v49, 4  ;;  %664 = vst [vmem:[#allocation1 + $0x20] ss:$2 sm:$0xff] %v478_v45  ;;  %v498_v49 = vld [vmem:[%s1755_s26 + $0x30] sm:$0xff] }
  0x8c   : > { %717 = vmatpush.xpose.msra.mxu0 %v508_v47  ;;  %757 = vmatpush.xpose.msra.mxu2 %v510_v48  ;;  %v392_v47 = vperm.slane %v1850_v30, 1  ;;  %v444_v48 = vperm.slane %v1853_v31, 0  ;;  %486 = vst [vmem:[%s1823_s28 + $0x10] sm:$0xff] %v478_v45  ;;  %v459_v16 = vrot.slane %v451_v8, 4  ;;  %v458_v22 = vrot.slane %v449_v15, 4  ;;  %v514_v45 = vld [vmem:[%s1755_s26 + $0xb0] sm:$0xff] }
  0x8d   : > { %737 = vmatpush.xpose.msra.mxu1 %v509_v52  ;;  %777 = vmatpush.xpose.msra.mxu3 %v511_v53  ;;  %v413_v52 = vsel %vm407_vm0, %v393_v35, %v404_v43  ;;  %v668_v53 = vld.sshfl [vmem:[#allocation1 + $0x8] sm:$0xff pattern:$0x75316420]  ;;  %v465_v55 = vsel %vm407_vm0, %v446_v37, %v457_v46  ;;  %v545_v35 = vld [vmem:[%s1755_s26 + $0x1a8] sm:$0xff]  ;;  %v547_v37 = vld [vmem:[%s1755_s26 + $0x1b8] sm:$0xff] }
  0x8e   : > { %v429_v54 = vmul.f32 %v413_v52, %v376_v42  ;;  %v403_v57 = vrot.slane %v392_v47, 4  ;;  %v464_v63 = vsel %vm407_vm0, %v444_v48, %v456_v58  ;;  %v529_v42 = vld [vmem:[%s1755_s26 + $0x128] sm:$0xff]  ;;  %v531_v43 = vld [vmem:[%s1755_s26 + $0x138] sm:$0xff]  ;;  %v496_v48 = vld [vmem:[%s1755_s26 + $0x20] sm:$0xff] }
  0x8f   : > { %v513_v46 = vld [vmem:[%s1755_s26 + $0xa8] sm:$0xff]  ;;  %v515_v47 = vld [vmem:[%s1755_s26 + $0xb8] sm:$0xff]  ;;  %v564_v8 = vld [vmem:[%s1755_s26 + $0x240] sm:$0xff] }
  0x90   : > { %718 = vmatpush.xpose.msra.mxu0 %v492_v59  ;;  %758 = vmatpush.xpose.msra.mxu2 %v494_v60  ;;  %v593_v59 = vld [vmem:[%s1755_s26 + $0x328] sm:$0xff]  ;;  %v595_v60 = vld [vmem:[%s1755_s26 + $0x338] sm:$0xff]  ;;  %v481_v61 = vadd.f32 %v465_v55, %v429_v54 }
  0x91   : > { %738 = vmatpush.xpose.msra.mxu1 %v493_v4  ;;  %778 = vmatpush.xpose.msra.mxu3 %v495_v7  ;;  %v397_v4 = vperm.slane %v1850_v30, 6  ;;  %v450_v7 = vperm.slane %v1853_v31, 6  ;;  %v544_v31 = vld [vmem:[%s1755_s26 + $0x1a0] sm:$0xff]  ;;  %v497_v52 = vld [vmem:[%s1755_s26 + $0x28] sm:$0xff]  ;;  %v647_v55 = vld [vmem:[%s1755_s26 + $0x4d8] sm:$0x7] }
  0x92   : > { %489 = vst [vmem:[%s1823_s28 + $0x28] sm:$0xff] %v481_v61  ;;  %v671_v38 = vld.sshfl [vmem:[#allocation1 + $0x20] sm:$0xff pattern:$0x75316420]  ;;  %v645_v54 = vld [vmem:[%s1755_s26 + $0x4c8] sm:$0x7] }
  0x93   : > { %759 = vmatmul.f32.vlgmr.msra.gmra.mxu2 %v669_v25  ;;  %719 = vmatmul.f32.vlgmr.msra.gmra.mxu0 %v667_v34  ;;  %676 = vst [vmem:[#allocation1 + $0x10] ss:$2 sm:$0xff] %v481_v61  ;;  %v467_v24 = vsel %vm407_vm0, %v450_v7, %v459_v16  ;;  %v414_v25 = vsel %vm407_vm0, %v395_v9, %v405_v18  ;;  %v629_v58 = vld [vmem:[%s1755_s26 + $0x448] sm:$0xff]  ;;  %v614_v61 = vld [vmem:[%s1755_s26 + $0x3d0] sm:$0xff]  ;;  %v583_v7 = vld [vmem:[%s1755_s26 + $0x2d8] sm:$0xff] }
  0x94   : > { %789 = vmatpush.xpose.msrb.mxu0 %v640_v62  ;;  %829 = vmatpush.xpose.msrb.mxu2 %v642_v3  ;;  %v412_v62 = vsel %vm407_vm0, %v391_v44, %v403_v57  ;;  %v430_v28 = vmul.f32 %v414_v25, %v377_v17  ;;  %v512_v44 = vld [vmem:[%s1755_s26 + $0xa0] sm:$0xff]  ;;  %v630_v57 = vld [vmem:[%s1755_s26 + $0x450] sm:$0xff]  ;;  %v551_v15 = vld [vmem:[%s1755_s26 + $0x1d8] sm:$0xff] }
  0x95   : > { %809 = vmatpush.xpose.msrb.mxu1 %v641_v5  ;;  %849 = vmatpush.xpose.msrb.mxu3 %v643_v12  ;;  %v428_v3 = vmul.f32 %v412_v62, %v375_v56  ;;  %v398_v5 = vperm.slane %v1850_v30, 7  ;;  %v378_v12 = vld [vmem:[%s1737_s1 + $0x38] sm:$0xff]  ;;  %v628_v56 = vld [vmem:[%s1755_s26 + $0x440] sm:$0xff]  ;;  %v613_v62 = vld [vmem:[%s1755_s26 + $0x3c8] sm:$0xff] }
  0x96   : > { %779 = vmatmul.f32.vlgmr.msra.gmra.mxu3 %v670_v39  ;;  %739 = vmatmul.f32.vlgmr.msra.gmra.mxu1 %v668_v53  ;;  %v672_v39 = vld.sshfl [vmem:[#allocation1 + $0x28] sm:$0xff pattern:$0x75316420]  ;;  %v499_v53 = vld [vmem:[%s1755_s26 + $0x38] sm:$0xff]  ;;  %v566_v9 = vld [vmem:[%s1755_s26 + $0x250] sm:$0xff] }
  0x97   : > { %v480_v11 = vadd.f32 %v464_v63, %v428_v3  ;;  %v406_v13 = vrot.slane %v398_v5, 4  ;;  %v615_v63 = vld [vmem:[%s1755_s26 + $0x3d8] sm:$0xff]  ;;  %v582_v5 = vld [vmem:[%s1755_s26 + $0x2d0] sm:$0xff]  ;;  %v532_v16 = vld [vmem:[%s1755_s26 + $0x140] sm:$0xff] }
  0x98   : > { %790 = vmatpush.xpose.msrb.mxu0 %v624_v20  ;;  %830 = vmatpush.xpose.msrb.mxu2 %v626_v21  ;;  %v562_v20 = vld [vmem:[%s1755_s26 + $0x230] sm:$0xff]  ;;  %v599_v3 = vld [vmem:[%s1755_s26 + $0x358] sm:$0xff]  ;;  %v533_v18 = vld [vmem:[%s1755_s26 + $0x148] sm:$0xff] }
  0x99   : > { %810 = vmatpush.xpose.msrb.mxu1 %v625_v26  ;;  %850 = vmatpush.xpose.msrb.mxu3 %v627_v27  ;;  %488 = vst [vmem:[%s1823_s28 + $0x20] sm:$0xff] %v480_v11  ;;  %v415_v21 = vsel %vm407_vm0, %v397_v4, %v406_v13  ;;  %v561_v26 = vld [vmem:[%s1755_s26 + $0x228] sm:$0xff]  ;;  %v563_v27 = vld [vmem:[%s1755_s26 + $0x238] sm:$0xff]  ;;  %v580_v4 = vld [vmem:[%s1755_s26 + $0x2c0] sm:$0xff] }
  0x9a   : > { %675 = vst [vmem:[#allocation1] ss:$2 sm:$0xff] %v480_v11  ;;  %v431_v23 = vmul.f32 %v415_v21, %v378_v12  ;;  %v567_v11 = vld [vmem:[%s1755_s26 + $0x258] sm:$0xff]  ;;  %v548_v12 = vld [vmem:[%s1755_s26 + $0x1c0] sm:$0xff]  ;;  %v550_v13 = vld [vmem:[%s1755_s26 + $0x1d0] sm:$0xff] }
  0x9b   : > { %v534_v17 = vld [vmem:[%s1755_s26 + $0x150] sm:$0xff] }
  0x9c   : > { %791 = vmatpush.xpose.msrb.mxu0 %v608_v29  ;;  %831 = vmatpush.xpose.msrb.mxu2 %v610_v33  ;;  %v466_v29 = vsel %vm407_vm0, %v448_v14, %v458_v22  ;;  %v483_v30 = vadd.f32 %v467_v24, %v431_v23  ;;  %v673_v33 = vld.sshfl [vmem:[#allocation1 + $0x30] sm:$0xff pattern:$0x75316420]  ;;  %v518_v21 = vld [vmem:[%s1755_s26 + $0xd0] sm:$0xff]  ;;  %v519_v23 = vld [vmem:[%s1755_s26 + $0xd8] sm:$0xff] }
  0x9d   : > { %811 = vmatpush.xpose.msrb.mxu1 %v609_v40  ;;  %851 = vmatpush.xpose.msrb.mxu3 %v611_v41  ;;  %v482_v34 = vadd.f32 %v466_v29, %v430_v28  ;;  %v528_v40 = vld [vmem:[%s1755_s26 + $0x120] sm:$0xff]  ;;  %v530_v41 = vld [vmem:[%s1755_s26 + $0x130] sm:$0xff]  ;;  %v549_v14 = vld [vmem:[%s1755_s26 + $0x1c8] sm:$0xff] }
  0x9e   : > { %491 = vst [vmem:[%s1823_s28 + $0x38] sm:$0xff] %v483_v30  ;;  %v517_v22 = vld [vmem:[%s1755_s26 + $0xc8] sm:$0xff]  ;;  %v500_v24 = vld [vmem:[%s1755_s26 + $0x40] sm:$0xff]  ;;  %v502_v25 = vld [vmem:[%s1755_s26 + $0x50] sm:$0xff] }
  0x9f   : > { %678 = vst [vmem:[#allocation1 + $0x30] ss:$2 sm:$0xff] %v483_v30  ;;  %v501_v28 = vld [vmem:[%s1755_s26 + $0x48] sm:$0xff]  ;;  %v503_v29 = vld [vmem:[%s1755_s26 + $0x58] sm:$0xff] }
  0xa0   : > { %792 = vmatpush.xpose.msrb.mxu0 %v592_v50  ;;  %832 = vmatpush.xpose.msrb.mxu2 %v594_v51  ;;  %490 = vst [vmem:[%s1823_s28 + $0x30] sm:$0xff] %v482_v34  ;;  %v644_v50 = vld [vmem:[%s1755_s26 + $0x4c0] sm:$0x7]  ;;  %v646_v51 = vld [vmem:[%s1755_s26 + $0x4d0] sm:$0x7] }
  0xa1   : > { %812 = vmatpush.xpose.msrb.mxu1 %v593_v59  ;;  %852 = vmatpush.xpose.msrb.mxu3 %v595_v60  ;;  %677 = vst [vmem:[#allocation1 + $0x20] ss:$2 sm:$0xff] %v482_v34  ;;  %v631_v59 = vld [vmem:[%s1755_s26 + $0x458] sm:$0xff]  ;;  %v612_v60 = vld [vmem:[%s1755_s26 + $0x3c0] sm:$0xff] }
  0xa2   : > { %v679_v30 = vld.sshfl [vmem:[#allocation1] sm:$0xff pattern:$0x75316420]  ;;  %v680_v34 = vld.sshfl [vmem:[#allocation1 + $0x8] sm:$0xff pattern:$0x75316420] }
  0xa4   : > { %793 = vmatpush.xpose.msrb.mxu0 %v576_v0  ;;  %833 = vmatpush.xpose.msrb.mxu2 %v578_v1  ;;  %v596_v0 = vld [vmem:[%s1755_s26 + $0x340] sm:$0xff]  ;;  %v598_v1 = vld [vmem:[%s1755_s26 + $0x350] sm:$0xff] }
  0xa5   : > { %813 = vmatpush.xpose.msrb.mxu1 %v577_v2  ;;  %853 = vmatpush.xpose.msrb.mxu3 %v579_v6  ;;  %v597_v2 = vld [vmem:[%s1755_s26 + $0x348] sm:$0xff] }
  0xa6   : > { %v581_v6 = vld [vmem:[%s1755_s26 + $0x2c8] sm:$0xff] }
  0xa8   : > { %794 = vmatpush.xpose.msrb.mxu0 %v560_v19  ;;  %834 = vmatpush.xpose.msrb.mxu2 %v562_v20  ;;  %v535_v19 = vld [vmem:[%s1755_s26 + $0x158] sm:$0xff]  ;;  %v516_v20 = vld [vmem:[%s1755_s26 + $0xc0] sm:$0xff] }
  0xa9   : > { %814 = vmatpush.xpose.msrb.mxu1 %v561_v26  ;;  %854 = vmatpush.xpose.msrb.mxu3 %v563_v27  ;;  %v648_v26 = vld [vmem:[%s1755_s26 + $0x4e0] sm:$0x7]  ;;  %v650_v27 = vld [vmem:[%s1755_s26 + $0x4f0] sm:$0x7] }
  0xac   : > { %795 = vmatpush.xpose.msrb.mxu0 %v544_v31  ;;  %835 = vmatpush.xpose.msrb.mxu2 %v546_v32  ;;  %v681_v31 = vld.sshfl [vmem:[#allocation1 + $0x10] sm:$0xff pattern:$0x75316420] }
  0xad   : > { %815 = vmatpush.xpose.msrb.mxu1 %v545_v35  ;;  %855 = vmatpush.xpose.msrb.mxu3 %v547_v37  ;;  %v649_v32 = vld [vmem:[%s1755_s26 + $0x4e8] sm:$0x7]  ;;  %v682_v35 = vld.sshfl [vmem:[#allocation1 + $0x18] sm:$0xff pattern:$0x75316420] }
  0xae   : > { %v634_v37 = vld [vmem:[%s1755_s26 + $0x470] sm:$0xff] }
  0xb0   : > { %796 = vmatpush.xpose.msrb.mxu0 %v528_v40  ;;  %836 = vmatpush.xpose.msrb.mxu2 %v530_v41  ;;  %v616_v40 = vld [vmem:[%s1755_s26 + $0x3e0] sm:$0xff]  ;;  %v618_v41 = vld [vmem:[%s1755_s26 + $0x3f0] sm:$0xff] }
  0xb1   : > { %816 = vmatpush.xpose.msrb.mxu1 %v529_v42  ;;  %856 = vmatpush.xpose.msrb.mxu3 %v531_v43  ;;  %v617_v42 = vld [vmem:[%s1755_s26 + $0x3e8] sm:$0xff]  ;;  %v619_v43 = vld [vmem:[%s1755_s26 + $0x3f8] sm:$0xff] }
  0xb4   : > { %797 = vmatpush.xpose.msrb.mxu0 %v512_v44  ;;  %837 = vmatpush.xpose.msrb.mxu2 %v514_v45  ;;  %v600_v44 = vld [vmem:[%s1755_s26 + $0x360] sm:$0xff]  ;;  %v602_v45 = vld [vmem:[%s1755_s26 + $0x370] sm:$0xff] }
  0xb5   : > { %817 = vmatpush.xpose.msrb.mxu1 %v513_v46  ;;  %857 = vmatpush.xpose.msrb.mxu3 %v515_v47  ;;  %v601_v46 = vld [vmem:[%s1755_s26 + $0x368] sm:$0xff]  ;;  %v603_v47 = vld [vmem:[%s1755_s26 + $0x378] sm:$0xff] }
  0xb8   : > { %798 = vmatpush.xpose.msrb.mxu0 %v496_v48  ;;  %838 = vmatpush.xpose.msrb.mxu2 %v498_v49  ;;  %v584_v48 = vld [vmem:[%s1755_s26 + $0x2e0] sm:$0xff]  ;;  %v586_v49 = vld [vmem:[%s1755_s26 + $0x2f0] sm:$0xff] }
  0xb9   : > { %818 = vmatpush.xpose.msrb.mxu1 %v497_v52  ;;  %858 = vmatpush.xpose.msrb.mxu3 %v499_v53  ;;  %v568_v52 = vld [vmem:[%s1755_s26 + $0x260] sm:$0xff]  ;;  %v570_v53 = vld [vmem:[%s1755_s26 + $0x270] sm:$0xff] }
  0xbb   : > { %839 = vmatmul.f32.vlgmr.msrb.gmra.mxu2 %v673_v33  ;;  %799 = vmatmul.f32.vlgmr.msrb.gmra.mxu0 %v671_v38  ;;  %v651_v33 = vld [vmem:[%s1755_s26 + $0x4f8] sm:$0x7]  ;;  %v633_v38 = vld [vmem:[%s1755_s26 + $0x468] sm:$0xff] }
  0xbc   : > { %869 = vmatpush.xpose.msra.mxu0 %v644_v50  ;;  %909 = vmatpush.xpose.msra.mxu2 %v646_v51  ;;  %v585_v50 = vld [vmem:[%s1755_s26 + $0x2e8] sm:$0xff]  ;;  %v587_v51 = vld [vmem:[%s1755_s26 + $0x2f8] sm:$0xff] }
  0xbd   : > { %889 = vmatpush.xpose.msra.mxu1 %v645_v54  ;;  %929 = vmatpush.xpose.msra.mxu3 %v647_v55  ;;  %v569_v54 = vld [vmem:[%s1755_s26 + $0x268] sm:$0xff]  ;;  %v571_v55 = vld [vmem:[%s1755_s26 + $0x278] sm:$0xff] }
  0xbe   : > { %859 = vmatmul.f32.vlgmr.msrb.gmra.mxu3 %v674_v36  ;;  %819 = vmatmul.f32.vlgmr.msrb.gmra.mxu1 %v672_v39  ;;  %v632_v36 = vld [vmem:[%s1755_s26 + $0x460] sm:$0xff]  ;;  %v635_v39 = vld [vmem:[%s1755_s26 + $0x478] sm:$0xff] }
  0xc0   : > { %870 = vmatpush.xpose.msra.mxu0 %v628_v56  ;;  %910 = vmatpush.xpose.msra.mxu2 %v630_v57  ;;  %v552_v56 = vld [vmem:[%s1755_s26 + $0x1e0] sm:$0xff]  ;;  %v554_v57 = vld [vmem:[%s1755_s26 + $0x1f0] sm:$0xff] }
  0xc1   : > { %890 = vmatpush.xpose.msra.mxu1 %v629_v58  ;;  %930 = vmatpush.xpose.msra.mxu3 %v631_v59  ;;  %v553_v58 = vld [vmem:[%s1755_s26 + $0x1e8] sm:$0xff]  ;;  %v555_v59 = vld [vmem:[%s1755_s26 + $0x1f8] sm:$0xff] }
  0xc4   : > { %871 = vmatpush.xpose.msra.mxu0 %v612_v60  ;;  %911 = vmatpush.xpose.msra.mxu2 %v614_v61  ;;  %v536_v60 = vld [vmem:[%s1755_s26 + $0x160] sm:$0xff]  ;;  %v538_v61 = vld [vmem:[%s1755_s26 + $0x170] sm:$0xff] }
  0xc5   : > { %891 = vmatpush.xpose.msra.mxu1 %v613_v62  ;;  %931 = vmatpush.xpose.msra.mxu3 %v615_v63  ;;  %v537_v62 = vld [vmem:[%s1755_s26 + $0x168] sm:$0xff]  ;;  %v539_v63 = vld [vmem:[%s1755_s26 + $0x178] sm:$0xff] }
  0xc8   : > { %872 = vmatpush.xpose.msra.mxu0 %v596_v0  ;;  %912 = vmatpush.xpose.msra.mxu2 %v598_v1  ;;  %v520_v0 = vld [vmem:[%s1755_s26 + $0xe0] sm:$0xff]  ;;  %v522_v1 = vld [vmem:[%s1755_s26 + $0xf0] sm:$0xff] }
  0xc9   : > { %892 = vmatpush.xpose.msra.mxu1 %v597_v2  ;;  %932 = vmatpush.xpose.msra.mxu3 %v599_v3  ;;  %v521_v2 = vld [vmem:[%s1755_s26 + $0xe8] sm:$0xff]  ;;  %v523_v3 = vld [vmem:[%s1755_s26 + $0xf8] sm:$0xff] }
  0xcc   : > { %873 = vmatpush.xpose.msra.mxu0 %v580_v4  ;;  %913 = vmatpush.xpose.msra.mxu2 %v582_v5  ;;  %v504_v4 = vld [vmem:[%s1755_s26 + $0x60] sm:$0xff]  ;;  %v506_v5 = vld [vmem:[%s1755_s26 + $0x70] sm:$0xff] }
  0xcd   : > { %893 = vmatpush.xpose.msra.mxu1 %v581_v6  ;;  %933 = vmatpush.xpose.msra.mxu3 %v583_v7  ;;  %v505_v6 = vld [vmem:[%s1755_s26 + $0x68] sm:$0xff]  ;;  %v507_v7 = vld [vmem:[%s1755_s26 + $0x78] sm:$0xff] }
  0xd0   : > { %874 = vmatpush.xpose.msra.mxu0 %v564_v8  ;;  %914 = vmatpush.xpose.msra.mxu2 %v566_v9  ;;  %v683_v8 = vld.sshfl [vmem:[#allocation1 + $0x20] sm:$0xff pattern:$0x75316420]  ;;  %v685_v9 = vld.sshfl [vmem:[#allocation1 + $0x30] sm:$0xff pattern:$0x75316420] }
  0xd1   : > { %894 = vmatpush.xpose.msra.mxu1 %v565_v10  ;;  %934 = vmatpush.xpose.msra.mxu3 %v567_v11  ;;  %v684_v10 = vld.sshfl [vmem:[#allocation1 + $0x28] sm:$0xff pattern:$0x75316420]  ;;  %v686_v11 = vld.sshfl [vmem:[#allocation1 + $0x38] sm:$0xff pattern:$0x75316420] }
  0xd4   : > { %875 = vmatpush.xpose.msra.mxu0 %v548_v12  ;;  %915 = vmatpush.xpose.msra.mxu2 %v550_v13 }
  0xd5   : > { %895 = vmatpush.xpose.msra.mxu1 %v549_v14  ;;  %935 = vmatpush.xpose.msra.mxu3 %v551_v15 }
  0xd8   : > { %876 = vmatpush.xpose.msra.mxu0 %v532_v16  ;;  %916 = vmatpush.xpose.msra.mxu2 %v534_v17 }
  0xd9   : > { %896 = vmatpush.xpose.msra.mxu1 %v533_v18  ;;  %936 = vmatpush.xpose.msra.mxu3 %v535_v19 }
  0xdc   : > { %877 = vmatpush.xpose.msra.mxu0 %v516_v20  ;;  %917 = vmatpush.xpose.msra.mxu2 %v518_v21 }
  0xdd   : > { %897 = vmatpush.xpose.msra.mxu1 %v517_v22  ;;  %937 = vmatpush.xpose.msra.mxu3 %v519_v23 }
  0xe0   : > { %878 = vmatpush.xpose.msra.mxu0 %v500_v24  ;;  %918 = vmatpush.xpose.msra.mxu2 %v502_v25 }
  0xe1   : > { %898 = vmatpush.xpose.msra.mxu1 %v501_v28  ;;  %938 = vmatpush.xpose.msra.mxu3 %v503_v29 }
  0xe3   : > { %879 = vmatmul.f32.vlgmr.msra.gmra.mxu0 %v679_v30  ;;  %919 = vmatmul.f32.vlgmr.msra.gmra.mxu2 %v681_v31 }
  0xe4   : > { %949 = vmatpush.xpose.msrb.mxu0 %v648_v26  ;;  %989 = vmatpush.xpose.msrb.mxu2 %v650_v27 }
  0xe5   : > { %969 = vmatpush.xpose.msrb.mxu1 %v649_v32  ;;  %1009 = vmatpush.xpose.msrb.mxu3 %v651_v33 }
  0xe6   : > { %899 = vmatmul.f32.vlgmr.msra.gmra.mxu1 %v680_v34  ;;  %939 = vmatmul.f32.vlgmr.msra.gmra.mxu3 %v682_v35 }
  0xe8   : > { %950 = vmatpush.xpose.msrb.mxu0 %v632_v36  ;;  %990 = vmatpush.xpose.msrb.mxu2 %v634_v37 }
  0xe9   : > { %970 = vmatpush.xpose.msrb.mxu1 %v633_v38  ;;  %1010 = vmatpush.xpose.msrb.mxu3 %v635_v39 }
  0xec   : > { %951 = vmatpush.xpose.msrb.mxu0 %v616_v40  ;;  %991 = vmatpush.xpose.msrb.mxu2 %v618_v41 }
  0xed   : > { %971 = vmatpush.xpose.msrb.mxu1 %v617_v42  ;;  %1011 = vmatpush.xpose.msrb.mxu3 %v619_v43 }
  0xf0   : > { %952 = vmatpush.xpose.msrb.mxu0 %v600_v44  ;;  %992 = vmatpush.xpose.msrb.mxu2 %v602_v45 }
  0xf1   : > { %972 = vmatpush.xpose.msrb.mxu1 %v601_v46  ;;  %1012 = vmatpush.xpose.msrb.mxu3 %v603_v47 }
  0xf4   : > { %953 = vmatpush.xpose.msrb.mxu0 %v584_v48  ;;  %993 = vmatpush.xpose.msrb.mxu2 %v586_v49 }
  0xf5   : > { %973 = vmatpush.xpose.msrb.mxu1 %v585_v50  ;;  %1013 = vmatpush.xpose.msrb.mxu3 %v587_v51 }
  0xf8   : > { %954 = vmatpush.xpose.msrb.mxu0 %v568_v52  ;;  %994 = vmatpush.xpose.msrb.mxu2 %v570_v53 }
  0xf9   : > { %974 = vmatpush.xpose.msrb.mxu1 %v569_v54  ;;  %1014 = vmatpush.xpose.msrb.mxu3 %v571_v55 }
  0xfc   : > { %955 = vmatpush.xpose.msrb.mxu0 %v552_v56  ;;  %995 = vmatpush.xpose.msrb.mxu2 %v554_v57 }
  0xfd   : > { %975 = vmatpush.xpose.msrb.mxu1 %v553_v58  ;;  %1015 = vmatpush.xpose.msrb.mxu3 %v555_v59 }
 0x100   : > { %956 = vmatpush.xpose.msrb.mxu0 %v536_v60  ;;  %996 = vmatpush.xpose.msrb.mxu2 %v538_v61 }
 0x101   : > { %976 = vmatpush.xpose.msrb.mxu1 %v537_v62  ;;  %1016 = vmatpush.xpose.msrb.mxu3 %v539_v63 }
 0x104   : > { %957 = vmatpush.xpose.msrb.mxu0 %v520_v0  ;;  %997 = vmatpush.xpose.msrb.mxu2 %v522_v1 }
 0x105   : > { %977 = vmatpush.xpose.msrb.mxu1 %v521_v2  ;;  %1017 = vmatpush.xpose.msrb.mxu3 %v523_v3 }
 0x108   : > { %958 = vmatpush.xpose.msrb.mxu0 %v504_v4  ;;  %998 = vmatpush.xpose.msrb.mxu2 %v506_v5 }
 0x109   : > { %978 = vmatpush.xpose.msrb.mxu1 %v505_v6  ;;  %1018 = vmatpush.xpose.msrb.mxu3 %v507_v7 }
 0x10b   : > { %959 = vmatmul.f32.vlgmr.msrb.gmra.mxu0 %v683_v8  ;;  %999 = vmatmul.f32.vlgmr.msrb.gmra.mxu2 %v685_v9 }
 0x10c   : > { %979 = vmatmul.f32.vlgmr.msrb.gmra.mxu1 %v684_v10  ;;  %1019 = vmatmul.f32.vlgmr.msrb.gmra.mxu3 %v686_v11 }
 0x10d   : > { %1474 = shalt.err (!%p1471_p9)
}
 0x10e   : > { %1267 = dma.vmem_to_hbm [thread:$0]  (%p1632_p10), %s1045_s25, 1024, %s1047_s6, %s1026_s27   ;;  %vm1023_vm1 = vcmask 609280  }
 0x10f   : > { %s1246_s24 = sshll.u32 %s1731_s15, 2  ;;  %s1251_s13 = sshll.u32 %s1608_s22, 2 }
 0x110   : > { %v720_v13 = vpop.f32.mrf.mxu0  ;;  %s1056_s28 = scalar_lea.hbm %s2055_s5, %s1251_s13  ;;  %s370_s17 = scalar_lea.vmem [#allocation11], %s1246_s24 }
 0x111   : > { %s1058_s16 = sshll.u32 %s370_s17, 4  ;;  %s1060_s11 = sshll.u32 %s1056_s28, 4  ;;  %s1059_s16 = int_to_ptr.vmem [resolvable:$true] %s1058_s16  ;;  %s1061_s11 = int_to_ptr.hbm [resolvable:$true] %s1060_s11 }
 0x112   : > { %s1031_s22 = scalar_lea.sflag [#allocation12], %s1731_s15  ;;  %s1489_s14 = sshra.s32 %s1061_s11, 4  ;;  %s1490_s14 = int_to_ptr.hbm [resolvable:$true] %s1489_s14 }
 0x113   : > { %v740_v12 = vpop.f32.mrf.mxu1  ;;  %s1491_s25 = scalar_lea.hbm %s1490_s14, 4  ;;  %s1495_s10 = scalar_lea.hbm %s2055_s5, 12 }
 0x114   : > { %v741_v14 = vadd.f32 %v740_v12, %v720_v13  ;;  %p1492_p1 = scmp.ne.s32.totalorder %s1490_s14, %s1491_s25  ;;  %p1496_p4 = scmp.lt.s32.totalorder %s1490_s14, %s2055_s5 }
 0x115   : > { %p1497_p5 = scmp.lt.s32.totalorder %s1495_s10, %s1491_s25 }
 0x116   : > { %v760_v15 = vpop.f32.mrf.mxu2  ;;  %p1493_p2 = pnand %p1492_p1, %p1632_p10 }
 0x117   : > { %v761_v16 = vadd.f32 %v760_v15, %v741_v14  ;;  %p1498_p6 = por %p1497_p5, %p1496_p4 }
 0x118   : > { %p1494_p3 = pneg %p1493_p2 }
 0x119   : > { %v780_v17 = vpop.f32.mrf.mxu3 }
 0x11a   : > { %v781_v18 = vadd.f32 %v780_v17, %v761_v16  ;;  %p1499_p12 = pnand %p1498_p6, %p1494_p3 }
 0x138   : > { %v800_v19 = vpop.f32.mrf.mxu0 }
 0x139   : > { %v801_v20 = vadd.f32 %v800_v19, %v781_v18 }
 0x13b   : > { %v820_v21 = vpop.f32.mrf.mxu1 }
 0x13c   : > { %v821_v22 = vadd.f32 %v820_v21, %v801_v20 }
 0x13e   : > { %v840_v23 = vpop.f32.mrf.mxu2 }
 0x13f   : > { %v841_v24 = vadd.f32 %v840_v23, %v821_v22 }
 0x141   : > { %v860_v25 = vpop.f32.mrf.mxu3 }
 0x142   : > { %v861_v27 = vadd.f32 %v860_v25, %v841_v24 }
 0x160   : > { %v880_v26 = vpop.f32.mrf.mxu0 }
 0x161   : > { %v881_v28 = vadd.f32 %v880_v26, %v861_v27 }
 0x163   : > { %v900_v29 = vpop.f32.mrf.mxu1 }
 0x164   : > { %v901_v31 = vadd.f32 %v900_v29, %v881_v28 }
 0x166   : > { %v920_v30 = vpop.f32.mrf.mxu2 }
 0x167   : > { %v921_v32 = vadd.f32 %v920_v30, %v901_v31 }
 0x169   : > { %v940_v33 = vpop.f32.mrf.mxu3 }
 0x16a   : > { %v941_v34 = vadd.f32 %v940_v33, %v921_v32 }
 0x188   : > { %v960_v35 = vpop.f32.mrf.mxu0 }
 0x189   : > { %v961_v36 = vadd.f32 %v960_v35, %v941_v34  ;;  %v980_v37 = vpop.f32.mrf.mxu1 }
 0x18b   : > { %v981_v38 = vadd.f32 %v980_v37, %v961_v36 }
 0x18e   : > { %v1000_v39 = vpop.f32.mrf.mxu2 }
 0x18f   : > { %v1001_v40 = vadd.f32 %v1000_v39, %v981_v38  ;;  %v1020_v41 = vpop.f32.mrf.mxu3 }
 0x191   : > { %v1021_v42 = vadd.f32 %v1020_v41, %v1001_v40 }
 0x193   : > { %1024 = vst.msk [vmem:[%s370_s17] sm:$0xf] %vm1023_vm1, %v1021_v42 }
 0x194   : > { %1502 = shalt.err (!%p1499_p12)
}
 0x195   : > { %1268 = dma.vmem_to_hbm [thread:$0]  (%p1632_p10), %s1059_s16, 64, %s1061_s11, %s1031_s22  }
 0x196 PF: > { %p1292_p0 = scmp.ge.s32.totalorder %s1553_s21, 2  ;;  %s1072_s15 = sand.u32 1, %s1541_s18  }
 0x197   : > { %s1073_s7 = scalar_lea.sflag [#allocation4], %s1072_s15 }
 0x198   : > { %p1285_p13 = pnand %p1292_p0, %p1636_p11 }
 0x19a   : > { %p1286_p7 = pneg %p1285_p13 }
 0x19c   : > { %1532 = dma.done.wait (%p1286_p7), %s1073_s7, 1024  }
 0x19d   : > { %1534 = vsyncadd (%p1286_p7), %s1073_s7, 4294966272  ;;  %s1083_s12 = scalar_lea.sflag [#allocation12], %s1072_s15 }
 0x19e   : > { %1536 = dma.done.wait (%p1286_p7), %s1083_s12, 64  }
 0x19f   : > { %1538 = vsyncadd (%p1286_p7), %s1083_s12, 4294967232  ;;  %s2071_s21 = sld [smem:[#allocation19_spill]]  ;;  %s2074_s18 = smov %s1545_s19 }
 0x1a0   : > { %s2072_s9 = sld [smem:[#allocation18_spill]] }
 0x1a1   : > { %s2073_s20 = sld [smem:[#allocation20_spill]] }
 0x1a5   : > { %p28_p10 = scmp.ge.s32.totalorder %s2071_s21, 5  }
 0x1a6   : > { %s2075_s19 = smov %s2072_s9 }
 0x1a7   :  { %30 = sbr.rel (!%p28_p10) target bundleno = 13 (0xd), region = 138 }
 0x1ac   :  { %1089 = vsyncpa [#allocation3], 1 }
 0x1ad   :  { %1091 = vsyncpa [#allocation3 + $0x1], 1 }
 0x1ae   :  { %1092 = vsyncpa [#allocation6], 1 }
 0x1af   :  { %1094 = vsyncpa [#allocation6 + $0x1], 1 }
 0x1b0   :  { %1095 = vsyncpa [#allocation9], 1 }
 0x1b1   :  { %1097 = vsyncpa [#allocation9 + $0x1], 1 }
 0x1b2   :  { %1098 = vsyncpa [#allocation4], 1 }
 0x1b3   :  { %1100 = vsyncpa [#allocation4 + $0x1], 1 }
 0x1b4   :  { %1101 = vsyncpa [#allocation12], 1 }
 0x1b5   :  { %1103 = vsyncpa [#allocation12 + $0x1], 1 }

</bundles_post_ra>
